<compile_context>
chip_gen: v7x
topology: tpu7x:2x2x1
jax: 0.10.0
libtpu: 0.0.40
codegen_flags: <defaults>
</compile_context>

<pallas_src>
import functools

import jax
import jax.numpy as jnp
from jax import lax
from jax.experimental import pallas as pl
from jax.experimental.pallas import tpu as pltpu


def _choose_block_rows(batch, num_classes, itemsize):
    """Pick a batch-tile size (multiple of 8) that keeps double-buffered
    inputs well under the smallest default scoped-VMEM limit (v5e: 16 MiB)."""
    c_lanes = ((num_classes + 127) // 128) * 128          # VMEM lane padding
    per_row = c_lanes * itemsize + 128 * 4                # logits + targets rows
    budget = 8 * 1024 * 1024                              # inputs, x2 dbl-buffer
    rows = budget // (2 * per_row)
    rows = min(rows, 8192, ((batch + 7) // 8) * 8)
    return max(8, (rows // 8) * 8)


def _cdw_ce_kernel(logits_ref, targets_ref, out_ref, *, alpha, eps, transform,
                   num_valid, padded_rows, block_rows):
    x = logits_ref[...].astype(jnp.float32)       # [TB, C]; cast rides the VPU
    tgt = targets_ref[...]                        # [TB, 1] int32
    tb, c = x.shape

    # (1, C) class-index iota; broadcasting against [TB, 1] operands avoids a
    # [TB, C] int32 temporary.
    col = lax.broadcasted_iota(jnp.int32, (1, c), 1)

    # --- cross entropy at target (single max pass, reused below) ------------
    m = jnp.max(x, axis=1, keepdims=True)                              # [TB,1]
    s = jnp.sum(jnp.exp(x - m), axis=1, keepdims=True)                 # [TB,1]
    x_t = jnp.sum(jnp.where(col == tgt, x, 0.0), axis=1, keepdims=True)
    ce = jnp.log(s) - (x_t - m)                                        # [TB,1]

    # --- predicted class = first argmax (torch.argmax semantics) ------------
    # TODO(synk): max+argmax could be fused into one XLU pass via a packed
    # value/index key; kept as two reductions for clarity.
    pred = jnp.min(jnp.where(x == m, col, c), axis=1, keepdims=True)   # [TB,1]

    # --- class-distance weights ---------------------------------------------
    dist = jnp.abs(pred - tgt).astype(jnp.float32)                     # [TB,1]
    if transform == "log":
        w = jnp.log(1.0 + alpha * dist + eps)
    elif transform == "power":
        w = jnp.exp(alpha * jnp.log(1.0 + dist))
    else:
        w = 1.0 + alpha * dist
    weighted = w * ce                                                  # [TB,1]

    # Zero padded rows of the last tile (trace-time branch: free when the
    # batch is already a multiple of the tile).
    if padded_rows != num_valid:
        rows = pl.program_id(0) * block_rows + lax.broadcasted_iota(
            jnp.int32, (tb, 1), 0)
        weighted = jnp.where(rows < num_valid, weighted, 0.0)

    # Per-tile partial sum, broadcast into a lane-dense (8,128)-aligned block:
    # unmasked stores, no carried accumulator -> batch axis stays "parallel".
    out_ref[...] = jnp.broadcast_to(jnp.sum(weighted), out_ref.shape)


def cdw_ce_loss(logits, targets, *, alpha=2.0, eps=1e-8, transform="log",
                reduction="mean", block_rows=None):
    """Class Distance Weighted CE loss (life2vec) — Pallas TPU forward."""
    batch, num_classes = logits.shape
    targets2d = targets.astype(jnp.int32).reshape(batch, 1)

    itemsize = jnp.dtype(logits.dtype).itemsize
    if block_rows is None:
        tb = _choose_block_rows(batch, num_classes, itemsize)
    else:
        tb = max(8, (int(block_rows) // 8) * 8)
    num_tiles = pl.cdiv(batch, tb)
    padded_rows = num_tiles * tb
    if padded_rows != batch:
        logits = jnp.pad(logits, ((0, padded_rows - batch), (0, 0)))
        targets2d = jnp.pad(targets2d, ((0, padded_rows - batch), (0, 0)))

    kernel = functools.partial(
        _cdw_ce_kernel, alpha=float(alpha), eps=float(eps), transform=transform,
        num_valid=batch, padded_rows=padded_rows, block_rows=tb)

    partials = pl.pallas_call(
        kernel,
        out_shape=jax.ShapeDtypeStruct((num_tiles, 8, 128), jnp.float32),
        grid_spec=pltpu.PrefetchScalarGridSpec(
            num_scalar_prefetch=0,
            grid=(num_tiles,),
            in_specs=[
                pl.BlockSpec((tb, num_classes), lambda i: (i, 0)),
                pl.BlockSpec((tb, 1), lambda i: (i, 0)),
            ],
            out_specs=pl.BlockSpec((1, 8, 128), lambda i: (i, 0, 0)),
        ),
        compiler_params=pltpu.CompilerParams(
            dimension_semantics=("parallel",),
            vmem_limit_bytes=32 * 1024 * 1024,
        ),
    )(logits, targets2d)

    total = jnp.sum(partials[:, 0, 0])
    if reduction == "mean":
        return total * jnp.float32(1.0 / batch)
    if reduction == "sum":
        return total
    # TODO(synk): reduction='none' (per-sample [B] vector) needs a per-row
    # output spec instead of per-tile partial sums; not emitted here.
    raise NotImplementedError("reduction must be 'mean' or 'sum'")


def _reference(logits, targets, alpha=2.0, eps=1e-8):
    # Pure-JAX reference mirroring the PyTorch module (transform='log', mean).
    logits = logits.astype(jnp.float32)
    logp = jax.nn.log_softmax(logits, axis=1)
    ce = -jnp.take_along_axis(logp, targets[:, None], axis=1)[:, 0]
    pred = jnp.argmax(logits, axis=1)
    dist = jnp.abs(pred - targets).astype(jnp.float32)
    w = jnp.log(1.0 + alpha * dist + eps)
    return jnp.mean(w * ce)


if __name__ == "__main__":
    # Case 1: original small shape, f32 logits.
    B, C = 8, 10
    key = jax.random.PRNGKey(0)
    k1, k2 = jax.random.split(key)
    logits = jax.random.normal(k1, (B, C), dtype=jnp.float32)
    targets = jax.random.randint(k2, (B,), 0, C, dtype=jnp.int32)

    loss = cdw_ce_loss(logits, targets)
    jax.block_until_ready(loss)
    ref = _reference(logits, targets)
    assert jnp.allclose(loss, ref, atol=1e-5, rtol=1e-5), (loss, ref)

    # Case 2: multi-tile grid + tail-row masking (B not a multiple of the tile).
    B2, C2 = 50, 7
    l2 = jax.random.normal(jax.random.PRNGKey(1), (B2, C2), dtype=jnp.float32)
    t2 = jax.random.randint(jax.random.PRNGKey(2), (B2,), 0, C2, dtype=jnp.int32)
    loss2 = cdw_ce_loss(l2, t2, block_rows=16)
    jax.block_until_ready(loss2)
    ref2 = _reference(l2, t2)
    assert jnp.allclose(loss2, ref2, atol=1e-5, rtol=1e-5), (loss2, ref2)

    # Case 3: native bf16 logits streamed from HBM, cast to f32 in-kernel.
    l3 = l2.astype(jnp.bfloat16)
    loss3 = cdw_ce_loss(l3, t2, block_rows=16)
    jax.block_until_ready(loss3)
    ref3 = _reference(l3.astype(jnp.float32), t2)
    assert jnp.allclose(loss3, ref3, atol=1e-4, rtol=1e-4), (loss3, ref3)

    print("KERNEL_OK")
</pallas_src>

<mosaic_0001>
module attributes {stable_mosaic.version = 11 : i64} {
  func.func @_cdw_ce_kernel(%arg0: i32, %arg1: memref<8x10xf32, #tpu.memory_space<vmem>>, %arg2: memref<8x1xi32, #tpu.memory_space<vmem>>, %arg3: memref<1x8x128xf32, #tpu.memory_space<vmem>>) attributes {dimension_semantics = [#tpu.dimension_semantics<parallel>], iteration_bounds = array<i64: 1>, scalar_prefetch = 0 : i64, scratch_operands = 0 : i64, tpu.core_type = #tpu.core_type<tc>, window_params = [{transform_indices = @transform_0, window_bounds = array<i64: 8, 10>}, {transform_indices = @transform_1, window_bounds = array<i64: 8, 1>}, {transform_indices = @transform_2, window_bounds = array<i64: 1, 8, 128>}]} {
    %c0 = arith.constant 0 : index
    %c0_0 = arith.constant 0 : index
    %0 = vector.load %arg1[%c0, %c0_0] : memref<8x10xf32, #tpu.memory_space<vmem>>, vector<8x10xf32>
    %c0_1 = arith.constant 0 : index
    %c0_2 = arith.constant 0 : index
    %1 = vector.load %arg2[%c0_1, %c0_2] : memref<8x1xi32, #tpu.memory_space<vmem>>, vector<8x1xi32>
    %2 = tpu.iota {dimensions = array<i32: 1>} : vector<1x10xi32>
    %cst = arith.constant dense<0xFF800000> : vector<8xf32>
    %3 = vector.multi_reduction <maximumf>, %0, %cst [1] : vector<8x10xf32> to vector<8xf32>
    %4 = vector.shape_cast %3 : vector<8xf32> to vector<8x1xf32>
    %5 = vector.broadcast %4 : vector<8x1xf32> to vector<8x10xf32>
    %6 = arith.subf %0, %5 : vector<8x10xf32>
    %7 = math.exp %6 : vector<8x10xf32>
    %cst_3 = arith.constant dense<0.000000e+00> : vector<8xf32>
    %8 = vector.multi_reduction <add>, %7, %cst_3 [1] : vector<8x10xf32> to vector<8xf32>
    %9 = vector.shape_cast %8 : vector<8xf32> to vector<8x1xf32>
    %10 = vector.broadcast %2 : vector<1x10xi32> to vector<8x10xi32>
    %11 = vector.broadcast %1 : vector<8x1xi32> to vector<8x10xi32>
    %12 = arith.cmpi eq, %10, %11 : vector<8x10xi32>
    %cst_4 = arith.constant 0.000000e+00 : f32
    %13 = vector.broadcast %cst_4 : f32 to vector<8x10xf32>
    %14 = arith.select %12, %0, %13 : vector<8x10xi1>, vector<8x10xf32>
    %cst_5 = arith.constant dense<0.000000e+00> : vector<8xf32>
    %15 = vector.multi_reduction <add>, %14, %cst_5 [1] : vector<8x10xf32> to vector<8xf32>
    %16 = vector.shape_cast %15 : vector<8xf32> to vector<8x1xf32>
    %17 = math.log %9 : vector<8x1xf32>
    %18 = arith.subf %16, %4 : vector<8x1xf32>
    %19 = arith.subf %17, %18 : vector<8x1xf32>
    %20 = vector.broadcast %4 : vector<8x1xf32> to vector<8x10xf32>
    %21 = arith.cmpf oeq, %0, %20 : vector<8x10xf32>
    %c10_i32 = arith.constant 10 : i32
    %22 = vector.shape_cast %2 : vector<1x10xi32> to vector<1x10xi32>
    %23 = vector.broadcast %22 : vector<1x10xi32> to vector<8x10xi32>
    %24 = vector.broadcast %c10_i32 : i32 to vector<8x10xi32>
    %25 = arith.select %21, %23, %24 : vector<8x10xi1>, vector<8x10xi32>
    %cst_6 = arith.constant dense<2147483647> : vector<8xi32>
    %26 = vector.multi_reduction <minsi>, %25, %cst_6 [1] : vector<8x10xi32> to vector<8xi32>
    %27 = vector.shape_cast %26 : vector<8xi32> to vector<8x1xi32>
    %28 = arith.subi %27, %1 : vector<8x1xi32>
    %29 = math.absi %28 : vector<8x1xi32>
    %30 = arith.sitofp %29 : vector<8x1xi32> to vector<8x1xf32>
    %cst_7 = arith.constant 2.000000e+00 : f32
    %31 = vector.broadcast %cst_7 : f32 to vector<8x1xf32>
    %32 = arith.mulf %31, %30 : vector<8x1xf32>
    %cst_8 = arith.constant 1.000000e+00 : f32
    %33 = vector.broadcast %cst_8 : f32 to vector<8x1xf32>
    %34 = arith.addf %33, %32 : vector<8x1xf32>
    %cst_9 = arith.constant 9.99999993E-9 : f32
    %35 = vector.broadcast %cst_9 : f32 to vector<8x1xf32>
    %36 = arith.addf %34, %35 : vector<8x1xf32>
    %37 = math.log %36 : vector<8x1xf32>
    %38 = arith.mulf %37, %19 : vector<8x1xf32>
    %39 = vector.shape_cast %38 : vector<8x1xf32> to vector<1x8x1xf32>
    %cst_10 = arith.constant dense<0.000000e+00> : vector<1xf32>
    %40 = vector.multi_reduction <add>, %39, %cst_10 [1, 2] : vector<1x8x1xf32> to vector<1xf32>
    %41 = vector.shape_cast %40 : vector<1xf32> to vector<1x1x1xf32>
    %42 = vector.extract %41[0, 0, 0] : f32 from vector<1x1x1xf32>
    %43 = vector.broadcast %42 : f32 to vector<1x8x128xf32>
    %c0_11 = arith.constant 0 : index
    %c0_12 = arith.constant 0 : index
    %c0_13 = arith.constant 0 : index
    %44 = vector.load %arg3[%c0_11, %c0_12, %c0_13] : memref<1x8x128xf32, #tpu.memory_space<vmem>>, vector<1x8x128xf32>
    tpu.vector_store %arg3[%c0_11, %c0_12, %c0_13], %43 {strides = array<i32>} : memref<1x8x128xf32, #tpu.memory_space<vmem>>, vector<1x8x128xf32>,
    return
  }
  func.func @transform_0(%arg0: i32) -> (i32, i32) {
    %c0_i32 = arith.constant 0 : i32
    %c0_i32_0 = arith.constant 0 : i32
    return %arg0, %c0_i32 : i32, i32
  }
  func.func @transform_1(%arg0: i32) -> (i32, i32) {
    %c0_i32 = arith.constant 0 : i32
    %c0_i32_0 = arith.constant 0 : i32
    return %arg0, %c0_i32 : i32, i32
  }
  func.func @transform_2(%arg0: i32) -> (i32, i32, i32) {
    %c0_i32 = arith.constant 0 : i32
    %c0_i32_0 = arith.constant 0 : i32
    %c0_i32_1 = arith.constant 0 : i32
    return %arg0, %c0_i32, %c0_i32_0 : i32, i32, i32
  }
}

</mosaic_0001>

<bundles_post_ra>
// kernel: tpu_custom_call.1
= control target key start
LH: loop header
LB: loop body
LE: loop exit
PB: predicated region body
PF: predicated region fallthrough
CT: control target
= control target key end

     0   :  { %vm16_vm0 = vcmask 80896   ;;  %s169_s0 = inlined_call_operand.vmem [shape: f32[8,10], index: 0, kind: input, shape index: {}]   ;;  %s170_s1 = inlined_call_operand.vmem [shape: s32[8,1], index: 1, kind: input, shape index: {}]   ;;  %s171_s2 = inlined_call_operand.hbm [shape: f32[1,8,128], index: 2, kind: output, shape index: {}]  }
   0x1   :  { %v12_v0 = vld [vmem:[%s169_s0] sm:$0xff] }
   0x2   :  { %v13_v1 = vld [vmem:[%s170_s1] sm:$0xff] }
   0x3   :  { %7 = vsyncpa [#allocation3], 0  ;;  %v17_v2 = vsel %vm16_vm0, %v12_v0, -inf  ;;  %v130_v3 = vmov 0   ;;  %v14_v4 = vlaneseq  ;;  %vm66_vm4 = vcmask 7168   ;;  %s131_s0 = smov [#allocation2]  }
   0x4   :  { %98 = vset.pattern.permute.xlu1 %v130_v3  ;;  %99 = vset.pattern.permute.xlu0 %v130_v3  ;;  %s85_s1 = sshll.u32 %s131_s0, 4  ;;  %s86_s1 = int_to_ptr.vmem [resolvable:$true] %s85_s1 }
   0x5   :  { %18 = vmax.xlane.f32.xlu0 %v17_v2  ;;  %27 = vperm.xlu1 %98, %v13_v1   ;;  %v15_v5 = vand.u32 127, %v14_v4  ;;  %s106_s14 = scalar_lea.vmem %s86_s1, 128  ;;  %p111_p1 = scmp.lt.s32.totalorder %s86_s1, %s86_s1 }
   0x6   :  { %p107_p0 = scmp.ne.s32.totalorder %s86_s1, %s106_s14  ;;  %p112_p2 = scmp.lt.s32.totalorder %s106_s14, %s106_s14 }
   0x8   :  { %p113_p3 = por %p112_p2, %p111_p1 }
   0xa   :  { %p114_p4 = pnand %p113_p3, %p107_p0 }
  0x84   :  { %v28_v13 = vpop.permute.xlu1 %27 }
  0x85   :  { %vm29_vm2 = vcmp.eq.s32.totalorder %v15_v5, %v28_v13 }
  0x86   :  { %v30_v15 = vsel %vm29_vm2, %v12_v0, 0.0 }
  0x87   :  { %v31_v17 = vsel %vm16_vm0, %v30_v15, 0.0 }
  0x92   :  { %v19_v6 = vpop.xlane.xlu0 %18 }
  0x93   :  { %v20_v7 = vsub.f32 %v12_v0, %v19_v6  ;;  %vm38_vm1 = vcmp.eq.f32.partialorder %v12_v0, %v19_v6 }
  0x94   :  { %v39_v8 = vsel %vm38_vm1, %v15_v5, 10 }
  0x95   :  { %v21_v9 = vmul.f32 1.442695, %v20_v7  ;;  %v40_v10 = vsel %vm16_vm0, %v39_v8, 2147483647 }
  0x96   :  { %v42_v11 = vshra.s32 %v40_v10, 16  ;;  %v41_v18 = vand.u32 65535, %v40_v10 }
  0x97   :  { %100 = vpow2.f32 %v21_v9 }
  0x98   :  { %v44_v12 = vcvt.s32.f32 %v42_v11  ;;  %v43_v20 = vcvt.s32.f32 %v41_v18 }
  0x9a   :  { %45 = vmin.xlane.f32.xlu0 %v44_v12 }
  0xa1   :  { %v101_v14 = vpop.eup %100 }
  0xa2   :  { %v23_v16 = vsel %vm16_vm0, %v101_v14, 0.0 }
  0xa3   :  { %24 = vadd.xlane.f32.xlu0 %v23_v16 }
  0xa7   :  { %32 = vadd.xlane.f32.xlu0 %v31_v17 }
 0x127   :  { %v46_v19 = vpop.xlane.xlu0 %45 }
 0x128   :  { %vm47_vm3 = vcmp.eq.f32.partialorder %v44_v12, %v46_v19  ;;  %v52_v22 = vcvt.f32.s32 %v46_v19 }
 0x129   :  { %v48_v21 = vsel %vm47_vm3, %v43_v20, inf }
 0x12a   :  { %49 = vmin.xlane.f32.xlu1 %v48_v21  ;;  %v53_v24 = vshll.u32 %v52_v22, 16 }
 0x130   :  { %v25_v30 = vpop.xlane.xlu0 %24 }
 0x131   :  { %102 = vlog2.f32 %v25_v30 }
 0x134   :  { %v33_v36 = vpop.xlane.xlu0 %32 }
 0x135   :  { %v36_v38 = vsub.f32 %v33_v36, %v19_v6 }
 0x13b   :  { %v103_v35 = vpop.eup %102 }
 0x13c   :  { %v35_v37 = vmul.f32 0.6931472, %v103_v35 }
 0x13e   :  { %v37_v40 = vsub.f32 %v35_v37, %v36_v38 }
 0x1b7   :  { %v50_v23 = vpop.xlane.xlu1 %49 }
 0x1b8   :  { %v51_v25 = vcvt.f32.s32 %v50_v23 }
 0x1ba   :  { %v54_v26 = vadd.s32 %v53_v24, %v51_v25 }
 0x1bc   :  { %v55_v27 = vsub.s32 %v54_v26, %v13_v1 }
 0x1be   :  { %v57_v28 = vsub.s32 0, %v55_v27 }
 0x1c0   :  { %v93_v29 = vmin.u32 %v57_v28, %v55_v27 }
 0x1c2   :  { %v59_v31 = vcvt.s32.f32 %v93_v29 }
 0x1c4   :  { %v60_v32 = vmul.f32 2.0, %v59_v31 }
 0x1c6   :  { %v61_v33 = vadd.f32 1.0, %v60_v32 }
 0x1c8   :  { %v62_v34 = vadd.f32 1e-08, %v61_v33 }
 0x1ca   :  { %104 = vlog2.f32 %v62_v34 }
 0x1d4   :  { %v105_v39 = vpop.eup %104 }
 0x1d5   :  { %v64_v41 = vmul.f32 0.6931472, %v105_v39 }
 0x1d7   :  { %v65_v42 = vmul.f32 %v64_v41, %v37_v40 }
 0x1d9   :  { %v67_v43 = vsel %vm66_vm4, %v65_v42, 0.0 }
 0x1da   :  { %68 = vadd.xlane.f32.xlu0 %v67_v43 }
 0x267   :  { %v69_v44 = vpop.xlane.xlu0 %68 }
 0x268   :  { %v70_v45 = vrot.slane %v69_v44, 4 }
 0x26a   :  { %v71_v46 = vadd.f32 %v70_v45, %v69_v44 }
 0x26c   :  { %v72_v47 = vrot.slane %v71_v46, 2 }
 0x26e   :  { %v73_v48 = vadd.f32 %v72_v47, %v71_v46 }
 0x270   :  { %v74_v49 = vrot.slane %v73_v48, 1 }
 0x272   :  { %v75_v50 = vadd.f32 %v74_v49, %v73_v48 }
 0x274   :  { %94 = vpush %v75_v50 }
 0x2a5   :  { %s95_s13 = spop %94 }
 0x2a6   :  { %v77_v51 = vstv %s95_s13 }
 0x2a7   :  { %78 = vst [vmem:[#allocation2] sm:$0xff] %v77_v51 }
 0x2a8   :  { %117 = shalt.err (!%p114_p4)
}
 0x2a9   :  { %s118_s17 = scalar_lea.hbm %s171_s2, 128 }
 0x2aa   :  { %p119_p5 = scmp.ne.s32.totalorder %s171_s2, %s118_s17  ;;  %p122_p6 = scmp.lt.u32.totalorder %s118_s17, %s171_s2 }
 0x2ac   :  { %p124_p7 = pnand %p122_p6, %p119_p5 }
 0x2ae   :  { %127 = shalt.err (!%p124_p7)
}
 0x2af   :  { %88 = dma.vmem_to_hbm [thread:$0]  %s86_s1, 128, %s171_s2, [#allocation3]  }
 0x2b0   :  { %128 = dma.done.wait [#allocation3], 128  }
 0x2b1   :  { %129 = vsyncadd [#allocation3], 4294967168 }
 0x2b2   :  { %92 = vsyncpa [#allocation3], 1 }

</bundles_post_ra>
